<compile_context>
chip_gen: v5e
topology: v5e:2x2
jax: 0.10.0
libtpu: 0.0.40
codegen_flags: <defaults>
</compile_context>

<pallas_src>
import functools

import jax
import jax.numpy as jnp
from jax.experimental import pallas as pl
from jax.experimental.pallas import tpu as pltpu


# ---------------------------------------------------------------------------
# Kernels
# ---------------------------------------------------------------------------

def _instance_norm_kernel(x_ref, o_ref, *, epsilon, inv_s):
    """Single pass: each tile holds full instance rows (rb, S).

    Fused-moment form: one streaming read computes sum(x) and sum(x*x);
    var = E[x^2] - mean^2 in fp32, clamped at 0.  The block's last dim is the
    full spatial extent, so there are no padded lanes and no masking.
    """
    x = x_ref[...].astype(jnp.float32)
    sx = jnp.sum(x, axis=-1, keepdims=True)
    sxx = jnp.sum(x * x, axis=-1, keepdims=True)
    mean = sx * inv_s
    var = jnp.maximum(sxx * inv_s - mean * mean, 0.0)
    inv = jax.lax.rsqrt(var + epsilon)
    o_ref[...] = ((x - mean) * inv).astype(o_ref.dtype)


def _stats_kernel(x_ref, mean_ref, inv_ref, *, epsilon, true_s, s_block):
    """Two-pass path, pass 1: accumulate per-row sum / sum-of-squares over
    S-chunks directly in the resident output blocks; finalize to mean and
    rsqrt(var + eps) on the last chunk."""
    j = pl.program_id(1)

    @pl.when(j == 0)
    def _():
        mean_ref[...] = jnp.zeros_like(mean_ref)
        inv_ref[...] = jnp.zeros_like(inv_ref)

    x = x_ref[...].astype(jnp.float32)
    if true_s % s_block != 0:
        # Ragged tail chunk: columns past true_s hold undefined data and must
        # not contribute to the sums.  (Static branch; for non-tail chunks the
        # mask is all-true.)
        col = jax.lax.broadcasted_iota(jnp.int32, x.shape, dimension=1)
        limit = true_s - j * s_block
        x = jnp.where(col < limit, x, 0.0)

    mean_ref[...] += jnp.sum(x, axis=-1, keepdims=True)      # running sum(x)
    inv_ref[...] += jnp.sum(x * x, axis=-1, keepdims=True)   # running sum(x^2)

    @pl.when(j == pl.num_programs(1) - 1)
    def _():
        inv_s = 1.0 / float(true_s)
        mean = mean_ref[...] * inv_s
        var = jnp.maximum(inv_ref[...] * inv_s - mean * mean, 0.0)
        mean_ref[...] = mean
        inv_ref[...] = jax.lax.rsqrt(var + epsilon)


def _normalize_kernel(x_ref, mean_ref, inv_ref, o_ref):
    """Two-pass path, pass 2: normalize each (rb, sb) tile."""
    x = x_ref[...].astype(jnp.float32)
    o_ref[...] = ((x - mean_ref[...]) * inv_ref[...]).astype(o_ref.dtype)


# ---------------------------------------------------------------------------
# Wrapper
# ---------------------------------------------------------------------------

def _round_up(a, b):
    return ((a + b - 1) // b) * b


def _device_kind():
    try:
        return jax.devices()[0].device_kind.lower()
    except Exception:
        return ""


def _is_two_core_chip():
    kind = _device_kind()
    return ("v7" in kind) or ("7x" in kind)


def _vmem_capacity_bytes():
    try:
        cap = int(pltpu.get_tpu_info().vmem_capacity_bytes)
        if cap > 0:
            return cap
    except Exception:
        pass
    # Generation-aware fallback: only v7x has 64 MiB per TensorCore.
    return (64 if _is_two_core_chip() else 128) * 1024 * 1024


def instance_norm(x, epsilon=1e-8, *, _force_two_pass=False, _max_s_block=None):
    """x: (N, C, D, H, W) -> (N, C, D, H, W), same dtype."""
    N, C, D, H, W = x.shape
    rows = N * C
    S = D * H * W
    orig_dtype = x.dtype
    itemsize = jnp.dtype(orig_dtype).itemsize
    sublane = {4: 8, 2: 16, 1: 32}.get(itemsize, 8)

    # Contiguous NCDHW -> (rows, S) is a free (metadata-only) reshape.
    x2d = x.reshape(rows, S)

    vmem_cap = _vmem_capacity_bytes()
    tile_budget = int(vmem_cap * 0.45)   # headroom for internal scratch
    vmem_limit = int(vmem_cap * 0.90)    # raise scoped limit toward physical

    two_tc = _is_two_core_chip()
    min_steps = 4 if two_tc else 2       # megacore needs more steps than 1-TC

    rows_up = _round_up(rows, sublane)

    # Realistic per-row VMEM cost of a single-pass tile:
    #   2x input + 2x output (double-buffered, native dtype)
    #   + fp32 working set actually materialized by the body
    #     (x_f32, x*x, cast temp; a bit more after a sub-32-bit upcast).
    f32_work = 16 if itemsize == 4 else 20
    per_row_bytes = S * (4 * itemsize + f32_work)
    max_rb = (tile_budget // per_row_bytes // sublane) * sublane

    use_single = (max_rb >= sublane) and not _force_two_pass
    rb = sublane
    if use_single:
        rb = min(max_rb, rows_up)
        # Keep >= min_steps grid steps when there is enough work.
        if rows_up >= min_steps * sublane:
            cap_rb = max(sublane, (rows_up // min_steps) // sublane * sublane)
            rb = min(rb, cap_rb)
        # Never let the block exceed the row extent (full-extent blocks are
        # always legal; otherwise rb stays a sublane multiple).
        rb = min(rb, rows)
        # v7x: few row blocks with large S -> S-chunked two-pass so the
        # pipeline (and, for the normalize pass, both TensorCores) engage.
        n_steps = pl.cdiv(rows, rb)
        big_work = rows * S * itemsize >= (32 << 20)
        if two_tc and n_steps < min_steps and S >= (8 << 10) and big_work:
            use_single = False

    if use_single:
        # -------- Single-pass path: whole instance rows per tile. --------
        grid = (pl.cdiv(rows, rb),)
        kernel = functools.partial(
            _instance_norm_kernel, epsilon=float(epsilon), inv_s=1.0 / float(S))

        out2d = pl.pallas_call(
            kernel,
            out_shape=jax.ShapeDtypeStruct((rows, S), orig_dtype),
            grid_spec=pltpu.PrefetchScalarGridSpec(
                num_scalar_prefetch=0,
                grid=grid,
                in_specs=[pl.BlockSpec((rb, S), lambda i: (i, 0))],
                out_specs=pl.BlockSpec((rb, S), lambda i: (i, 0)),
            ),
            compiler_params=pltpu.CompilerParams(
                dimension_semantics=("parallel",),
                vmem_limit_bytes=vmem_limit,
            ),
        )(x2d)
    else:
        # -------- Two-pass S-chunked path (very large D*H*W). --------
        rb = min(rows_up, 8 * sublane)
        rb = min(rb, rows)   # full-extent if rows < rb

        def pick_sb(per_elem_bytes):
            sb = (tile_budget // (max(rb, 1) * per_elem_bytes)) // 128 * 128
            sb = max(sb, 128)
            if _max_s_block is not None:
                sb = max(128, min(sb, (_max_s_block // 128) * 128))
            if sb >= S:
                return S            # single full-extent chunk
            return sb

        # Stats pass: (rb, sb) input double-buffered + fp32 x / x*x; (rb,1)
        # outputs are negligible.  Normalize pass: 2x in + 2x out native +
        # small fp32 working set.  Size the S-chunk per pass.
        sb_stats = pick_sb(2 * itemsize + 12)
        sb_norm = pick_sb(4 * itemsize + 8)

        stats_kernel = functools.partial(
            _stats_kernel, epsilon=float(epsilon), true_s=S, s_block=sb_stats)

        grid_stats = (pl.cdiv(rows, rb), pl.cdiv(S, sb_stats))
        mean, inv = pl.pallas_call(
            stats_kernel,
            out_shape=(jax.ShapeDtypeStruct((rows, 1), jnp.float32),
                       jax.ShapeDtypeStruct((rows, 1), jnp.float32)),
            grid_spec=pltpu.PrefetchScalarGridSpec(
                num_scalar_prefetch=0,
                grid=grid_stats,
                in_specs=[pl.BlockSpec((rb, sb_stats), lambda i, j: (i, j))],
                out_specs=[pl.BlockSpec((rb, 1), lambda i, j: (i, 0)),
                           pl.BlockSpec((rb, 1), lambda i, j: (i, 0))],
            ),
            compiler_params=pltpu.CompilerParams(
                dimension_semantics=("parallel", "arbitrary"),
                vmem_limit_bytes=vmem_limit,
            ),
        )(x2d)

        grid_norm = (pl.cdiv(rows, rb), pl.cdiv(S, sb_norm))
        out2d = pl.pallas_call(
            _normalize_kernel,
            out_shape=jax.ShapeDtypeStruct((rows, S), orig_dtype),
            grid_spec=pltpu.PrefetchScalarGridSpec(
                num_scalar_prefetch=0,
                grid=grid_norm,
                in_specs=[pl.BlockSpec((rb, sb_norm), lambda i, j: (i, j)),
                          pl.BlockSpec((rb, 1), lambda i, j: (i, 0)),
                          pl.BlockSpec((rb, 1), lambda i, j: (i, 0))],
                out_specs=pl.BlockSpec((rb, sb_norm), lambda i, j: (i, j)),
            ),
            compiler_params=pltpu.CompilerParams(
                dimension_semantics=("parallel", "parallel"),
                vmem_limit_bytes=vmem_limit,
            ),
        )(x2d, mean, inv)

    return out2d.reshape(N, C, D, H, W)


def _reference(x, epsilon=1e-8):
    m = jnp.mean(x, axis=(2, 3, 4), keepdims=True)
    xc = x - m
    v = jnp.mean(xc * xc, axis=(2, 3, 4), keepdims=True)
    return xc * jax.lax.rsqrt(v + epsilon)


if __name__ == "__main__":
    key = jax.random.PRNGKey(0)
    k1, k2, k3 = jax.random.split(key, 3)

    # 1) Aligned fp32 input -> single-pass path.
    x1 = jax.random.normal(k1, (2, 4, 8, 8, 8), dtype=jnp.float32)
    o1 = jax.block_until_ready(instance_norm(x1))
    r1 = _reference(x1)
    assert o1.shape == x1.shape and o1.dtype == x1.dtype
    assert jnp.allclose(o1, r1, atol=1e-5, rtol=1e-5), "fp32 single-pass mismatch"

    # 2) Unaligned shape (rows=6, S=210): single-pass with full-extent S and a
    #    partial row block, plus the forced two-pass path (full-chunk and
    #    S-chunked-with-tail-mask variants).
    x2 = jax.random.normal(k2, (2, 3, 5, 6, 7), dtype=jnp.float32)
    r2 = _reference(x2)
    o2 = jax.block_until_ready(instance_norm(x2))
    assert jnp.allclose(o2, r2, atol=1e-5, rtol=1e-5), "unaligned single-pass mismatch"
    o2t = jax.block_until_ready(instance_norm(x2, _force_two_pass=True))
    assert jnp.allclose(o2t, r2, atol=1e-4, rtol=1e-4), "two-pass (full chunk) mismatch"
    o2c = jax.block_until_ready(
        instance_norm(x2, _force_two_pass=True, _max_s_block=128))
    assert jnp.allclose(o2c, r2, atol=1e-4, rtol=1e-4), "two-pass (chunked) mismatch"

    # 3) bf16 input -> 16-row sublane packing, native-dtype DMA, fp32 stats.
    x3 = jax.random.normal(k3, (2, 4, 4, 8, 8), dtype=jnp.bfloat16)
    o3 = jax.block_until_ready(instance_norm(x3))
    r3 = _reference(x3.astype(jnp.float32)).astype(jnp.bfloat16)
    assert o3.dtype == jnp.bfloat16
    assert jnp.allclose(o3.astype(jnp.float32), r3.astype(jnp.float32),
                        atol=2e-2, rtol=2e-2), "bf16 mismatch"

    print("KERNEL_OK")
</pallas_src>

<mosaic_0001>
module attributes {stable_mosaic.version = 11 : i64} {
  func.func @_instance_norm_kernel(%arg0: i32, %arg1: memref<8x512xf32, #tpu.memory_space<vmem>>, %arg2: memref<8x512xf32, #tpu.memory_space<vmem>>) attributes {dimension_semantics = [#tpu.dimension_semantics<parallel>], iteration_bounds = array<i64: 1>, scalar_prefetch = 0 : i64, scratch_operands = 0 : i64, tpu.core_type = #tpu.core_type<tc>, window_params = [{transform_indices = @transform_0, window_bounds = array<i64: 8, 512>}, {transform_indices = @transform_1, window_bounds = array<i64: 8, 512>}]} {
    %c0 = arith.constant 0 : index
    %c0_0 = arith.constant 0 : index
    %0 = vector.load %arg1[%c0, %c0_0] : memref<8x512xf32, #tpu.memory_space<vmem>>, vector<8x512xf32>
    %cst = arith.constant dense<0.000000e+00> : vector<8xf32>
    %1 = vector.multi_reduction <add>, %0, %cst [1] : vector<8x512xf32> to vector<8xf32>
    %2 = vector.shape_cast %1 : vector<8xf32> to vector<8x1xf32>
    %3 = arith.mulf %0, %0 : vector<8x512xf32>
    %cst_1 = arith.constant dense<0.000000e+00> : vector<8xf32>
    %4 = vector.multi_reduction <add>, %3, %cst_1 [1] : vector<8x512xf32> to vector<8xf32>
    %5 = vector.shape_cast %4 : vector<8xf32> to vector<8x1xf32>
    %cst_2 = arith.constant 0.001953125 : f32
    %6 = vector.broadcast %cst_2 : f32 to vector<8x1xf32>
    %7 = arith.mulf %2, %6 : vector<8x1xf32>
    %cst_3 = arith.constant 0.001953125 : f32
    %8 = vector.broadcast %cst_3 : f32 to vector<8x1xf32>
    %9 = arith.mulf %5, %8 : vector<8x1xf32>
    %10 = arith.mulf %7, %7 : vector<8x1xf32>
    %11 = arith.subf %9, %10 : vector<8x1xf32>
    %cst_4 = arith.constant 0.000000e+00 : f32
    %12 = vector.broadcast %cst_4 : f32 to vector<8x1xf32>
    %13 = arith.maximumf %11, %12 : vector<8x1xf32>
    %cst_5 = arith.constant 9.99999993E-9 : f32
    %14 = vector.broadcast %cst_5 : f32 to vector<8x1xf32>
    %15 = arith.addf %13, %14 : vector<8x1xf32>
    %16 = math.rsqrt %15 : vector<8x1xf32>
    %17 = vector.broadcast %7 : vector<8x1xf32> to vector<8x512xf32>
    %18 = arith.subf %0, %17 : vector<8x512xf32>
    %19 = vector.broadcast %16 : vector<8x1xf32> to vector<8x512xf32>
    %20 = arith.mulf %18, %19 : vector<8x512xf32>
    %c0_6 = arith.constant 0 : index
    %c0_7 = arith.constant 0 : index
    %21 = vector.load %arg2[%c0_6, %c0_7] : memref<8x512xf32, #tpu.memory_space<vmem>>, vector<8x512xf32>
    tpu.vector_store %arg2[%c0_6, %c0_7], %20 {strides = array<i32>} : memref<8x512xf32, #tpu.memory_space<vmem>>, vector<8x512xf32>,
    return
  }
  func.func @transform_0(%arg0: i32) -> (i32, i32) {
    %c0_i32 = arith.constant 0 : i32
    %c0_i32_0 = arith.constant 0 : i32
    return %arg0, %c0_i32 : i32, i32
  }
  func.func @transform_1(%arg0: i32) -> (i32, i32) {
    %c0_i32 = arith.constant 0 : i32
    %c0_i32_0 = arith.constant 0 : i32
    return %arg0, %c0_i32 : i32, i32
  }
}

</mosaic_0001>

<bundles_post_ra>
// kernel: tpu_custom_call.1
= control target key start
LH: loop header
LB: loop body
LE: loop exit
PB: predicated region body
PF: predicated region fallthrough
CT: control target
= control target key end

     0   :  { %6 = vsyncpa [#allocation3], 0  ;;  %s160_s0 = inlined_call_operand.hbm [shape: f32[8,512], index: 0, kind: input, shape index: {}]   ;;  %s161_s1 = inlined_call_operand.hbm [shape: f32[8,512], index: 1, kind: output, shape index: {}]  }
   0x1   :  { %7 = vsyncpa [#allocation4], 0  ;;  %s13_s8 = sshll.u32 %s160_s0, 4  ;;  %s142_s9 = smov [#allocation2]   ;;  %s14_s8 = int_to_ptr.hbm [resolvable:$true] %s13_s8 }
   0x2   :  { %s15_s10 = sshll.u32 %s142_s9, 4  ;;  %s16_s10 = int_to_ptr.vmem [resolvable:$true] %s15_s10 }
   0x3   :  { %18 = dma.hbm_to_vmem [thread:$0]  %s14_s8, 512, %s16_s10, [#allocation3]  }
   0x4   :  { %138 = dma.done.wait [#allocation3], 512  }
   0x5   :  { %139 = vsyncadd [#allocation3], 4294966784  ;;  %v23_v0 = vld [vmem:[#allocation2] sm:$0xff]  ;;  %v24_v1 = vld [vmem:[#allocation2 + $0x8] sm:$0xff]  ;;  %s143_s0 = smov [#allocation5]   ;;  %s76_s14 = sshll.u32 %s161_s1, 4  ;;  %s77_s14 = int_to_ptr.hbm [resolvable:$true] %s76_s14 }
   0x6   :  { %v25_v2 = vld [vmem:[#allocation2 + $0x10] sm:$0xff]  ;;  %v27_v3 = vadd.f32 %v24_v1, %v23_v0  ;;  %v32_v4 = vmul.f32 %v23_v0, %v23_v0  ;;  %v33_v5 = vmul.f32 %v24_v1, %v24_v1  ;;  %v26_v6 = vld [vmem:[#allocation2 + $0x18] sm:$0xff]  ;;  %s74_s11 = sshll.u32 %s143_s0, 4  ;;  %s75_s11 = int_to_ptr.vmem [resolvable:$true] %s74_s11 }
   0x7   :  { %v34_v8 = vmul.f32 %v25_v2, %v25_v2  ;;  %v35_v11 = vmul.f32 %v26_v6, %v26_v6 }
   0x8   :  { %v28_v7 = vadd.f32 %v27_v3, %v25_v2  ;;  %v36_v9 = vadd.f32 %v33_v5, %v32_v4 }
   0xa   :  { %v29_v10 = vadd.f32 %v28_v7, %v26_v6  ;;  %v37_v12 = vadd.f32 %v36_v9, %v34_v8 }
   0xc   :  { %30 = vadd.xlane.f32.xlu0 %v29_v10  ;;  %v38_v13 = vadd.f32 %v37_v12, %v35_v11 }
  0x14   :  { %39 = vadd.xlane.f32.xlu0 %v38_v13 }
  0x7f   :  { %v31_v14 = vpop.xlane.xlu0 %30 }
  0x80   :  { %v41_v15 = vmul.f32 0.001953125, %v31_v14 }
  0x82   :  { %v43_v17 = vmul.f32 %v41_v15, %v41_v15  ;;  %v57_v28 = vsub.f32 %v23_v0, %v41_v15  ;;  %v58_v29 = vsub.f32 %v24_v1, %v41_v15  ;;  %v59_v30 = vsub.f32 %v25_v2, %v41_v15 }
  0x83   :  { %v60_v31 = vsub.f32 %v26_v6, %v41_v15 }
  0x87   :  { %v40_v16 = vpop.xlane.xlu0 %39 }
  0x88   :  { %v42_v18 = vmul.f32 0.001953125, %v40_v16 }
  0x8a   :  { %v44_v19 = vsub.f32 %v42_v18, %v43_v17 }
  0x8c   :  { %v45_v20 = vmax.f32 %v44_v19, 0.0 }
  0x8e   :  { %v46_v21 = vadd.f32 1e-08, %v45_v20 }
  0x90   :  { %88 = vrsqrt.f32 %v46_v21  ;;  %vm53_vm1 = vweird.f32 %v46_v21 }
  0x96   :  { %v89_v22 = vpop.eup %88 }
  0x97   :  { %v48_v23 = vmul.f32 %v89_v22, %v46_v21  ;;  %vm54_vm0 = vweird.f32 %v89_v22 }
  0x98   :  { %vm55_vm2 = vmor %vm53_vm1, %vm54_vm0 }
  0x99   :  { %v49_v24 = vmul.f32 %v89_v22, %v48_v23 }
  0x9b   :  { %v50_v25 = vmul.f32 0.5, %v49_v24 }
  0x9d   :  { %v51_v26 = vsub.f32 1.5, %v50_v25 }
  0x9f   :  { %v52_v27 = vmul.f32 %v89_v22, %v51_v26 }
  0xa1   :  { %v56_v32 = vsel %vm55_vm2, %v89_v22, %v52_v27 }
  0xa2   :  { %v61_v33 = vmul.f32 %v57_v28, %v56_v32  ;;  %v62_v34 = vmul.f32 %v58_v29, %v56_v32  ;;  %v63_v35 = vmul.f32 %v59_v30, %v56_v32  ;;  %v64_v36 = vmul.f32 %v60_v31, %v56_v32 }
  0xa4   :  { %65 = vst [vmem:[#allocation5] sm:$0xff] %v61_v33 }
  0xa5   :  { %66 = vst [vmem:[#allocation5 + $0x8] sm:$0xff] %v62_v34 }
  0xa6   :  { %67 = vst [vmem:[#allocation5 + $0x10] sm:$0xff] %v63_v35 }
  0xa7   :  { %68 = vst [vmem:[#allocation5 + $0x18] sm:$0xff] %v64_v36 }
  0xa8   :  { %79 = dma.vmem_to_hbm [thread:$0]  %s75_s11, 512, %s77_s14, [#allocation4]  }
  0xa9   :  { %140 = dma.done.wait [#allocation4], 512  }
  0xaa   :  { %141 = vsyncadd [#allocation4], 4294966784 }
  0xab   :  { %84 = vsyncpa [#allocation3], 1 }
  0xac   :  { %85 = vsyncpa [#allocation4], 1 }

</bundles_post_ra>
